<compile_context>
chip_gen: v6e
topology: v6e:2x2x1
jax: 0.10.0
libtpu: 0.0.40
codegen_flags: <defaults>
</compile_context>

<pallas_src>
import functools

import jax
import jax.numpy as jnp
from jax import lax
from jax.experimental import pallas as pl
from jax.experimental.pallas import tpu as pltpu


def _choose_tk(hw, max_tk=2048):
    """Largest lane-aligned (multiple of 128) divisor of hw that is <= max_tk."""
    if hw <= max_tk:
        return hw
    for tk in range(max_tk - max_tk % 128, 0, -128):
        if hw % tk == 0:
            return tk
    return hw  # no aligned divisor found; fall back to the full contraction axis


def _gram_accumulate(f, acc_ref, use_bf16):
    """acc_ref (C,C) f32 += f @ f^T without materializing a transpose."""
    if use_bf16:
        f = f.astype(jnp.bfloat16)
    acc_ref[...] += lax.dot_general(
        f, f,
        dimension_numbers=(((1,), (1,)), ((), ())),  # contract last dims
        preferred_element_type=jnp.float32,
    )


# ----------------------------------------------------------------------------
# Gram-matrix kernel (used to build the "target" at module-init time).
# ----------------------------------------------------------------------------
def _gram_kernel(f_ref, g_ref, acc_ref, *, inv_denom, use_bf16):
    k = pl.program_id(1)

    @pl.when(k == 0)
    def _():
        acc_ref[...] = jnp.zeros_like(acc_ref)

    _gram_accumulate(f_ref[...], acc_ref, use_bf16)

    @pl.when(k == pl.num_programs(1) - 1)
    def _():
        g_ref[...] = (acc_ref[...] * inv_denom).astype(g_ref.dtype)


def gram_matrix_pallas(x, *, use_bf16=True, max_tk=2048):
    """x: (B, C, H, W) -> (B, C, C) gram matrices, divided by C*H*W."""
    B, C, H, W = x.shape
    HW = H * W
    TK = _choose_tk(HW, max_tk)
    feats = x.reshape(B, C, HW)
    kernel = functools.partial(
        _gram_kernel, inv_denom=1.0 / float(C * HW), use_bf16=use_bf16)
    return pl.pallas_call(
        kernel,
        out_shape=jax.ShapeDtypeStruct((B, C, C), jnp.float32),
        grid=(B, HW // TK),
        in_specs=[pl.BlockSpec((None, C, TK), lambda b, k: (b, 0, k))],
        out_specs=pl.BlockSpec((None, C, C), lambda b, k: (b, 0, 0)),
        scratch_shapes=[pltpu.VMEM((C, C), jnp.float32)],
        compiler_params=pltpu.CompilerParams(
            dimension_semantics=("parallel", "arbitrary"),
            vmem_limit_bytes=32 * 1024 * 1024,
        ),
    )(feats)


# ----------------------------------------------------------------------------
# Fused StyleLoss forward kernel: K-tiled per-batch gram (MXU) + per-batch SSE
# against the target gram.  Scalar loss finalized in the wrapper.
# ----------------------------------------------------------------------------
def _style_loss_kernel(f_ref, t_ref, sse_ref, acc_ref, *, inv_gram_denom,
                       use_bf16):
    k = pl.program_id(1)

    @pl.when(k == 0)
    def _():
        acc_ref[...] = jnp.zeros_like(acc_ref)

    _gram_accumulate(f_ref[...], acc_ref, use_bf16)

    @pl.when(k == pl.num_programs(1) - 1)
    def _():
        G = acc_ref[...] * inv_gram_denom                  # (C, C), scaled once
        d = G - t_ref[...].astype(jnp.float32)
        sse_ref[...] = jnp.sum(d * d, axis=(0, 1), keepdims=True)  # (1, 1)


def style_loss_forward(x, target_gram, *, use_bf16=True, max_tk=2048):
    """StyleLoss.forward.

    Args:
      x:           (B, C, H, W) input feature map.
      target_gram: (B, C, C) precomputed target gram (the module "parameter").

    Returns:
      (input_unchanged, loss_scalar)
    """
    B, C, H, W = x.shape
    HW = H * W
    TK = _choose_tk(HW, max_tk)
    feats = x.reshape(B, C, HW)

    kernel = functools.partial(
        _style_loss_kernel,
        inv_gram_denom=1.0 / float(C * HW),
        use_bf16=use_bf16,
    )

    sse = pl.pallas_call(
        kernel,
        out_shape=jax.ShapeDtypeStruct((B, 1, 1), jnp.float32),
        grid=(B, HW // TK),
        in_specs=[
            pl.BlockSpec((None, C, TK), lambda b, k: (b, 0, k)),  # feature K-tile
            pl.BlockSpec((None, C, C), lambda b, k: (b, 0, 0)),   # target (k-resident)
        ],
        out_specs=pl.BlockSpec((None, 1, 1), lambda b, k: (b, 0, 0)),
        scratch_shapes=[pltpu.VMEM((C, C), jnp.float32)],         # gram accumulator
        compiler_params=pltpu.CompilerParams(
            dimension_semantics=("parallel", "arbitrary"),        # batch // cores
            vmem_limit_bytes=32 * 1024 * 1024,
        ),
    )(feats, target_gram)

    loss = jnp.sum(sse) / float(B * C * C)   # mean over all B*C*C gram elements
    # PyTorch forward returns the input unchanged; loss is a side output.
    return x, loss


# ----------------------------------------------------------------------------
# Pure-JAX reference for verification (mirrors the bf16 MXU input cast).
# ----------------------------------------------------------------------------
def _gram_ref(x, use_bf16):
    B, C, H, W = x.shape
    f = x.reshape(B, C, H * W)
    if use_bf16:
        f = f.astype(jnp.bfloat16)
    g = jnp.einsum("bik,bjk->bij", f, f, preferred_element_type=jnp.float32)
    return g / float(C * H * W)


if __name__ == "__main__":
    key = jax.random.PRNGKey(0)
    k_tgt, k_in = jax.random.split(key)

    B, C, H, W = 2, 4, 16, 16
    target_feature = jax.random.normal(k_tgt, (B, C, H, W), dtype=jnp.float32)
    x = jax.random.normal(k_in, (B, C, H, W), dtype=jnp.float32)

    # __init__: target = gram_matrix(target_feature).detach()
    target_gram = jax.block_until_ready(gram_matrix_pallas(target_feature))

    # forward(input)
    out, loss = style_loss_forward(x, target_gram)
    out, loss = jax.block_until_ready((out, loss))

    # Verify against a plain-JAX reference (same bf16 MXU-input cast, f32 acc).
    tgt_ref = _gram_ref(target_feature, use_bf16=True)
    gram_ref = _gram_ref(x, use_bf16=True)
    loss_ref = jnp.mean((gram_ref - target_gram) ** 2)

    assert jnp.allclose(target_gram, tgt_ref, atol=1e-4, rtol=1e-4), (
        float(jnp.max(jnp.abs(target_gram - tgt_ref))))
    assert jnp.allclose(loss, loss_ref, atol=1e-6, rtol=1e-3), (
        float(loss), float(loss_ref))
    assert jnp.array_equal(out, x)  # forward returns input unchanged

    print("KERNEL_OK")
</pallas_src>

<mosaic_0001>
module attributes {stable_mosaic.version = 11 : i64} {
  func.func @_gram_kernel(%arg0: i32, %arg1: i32, %arg2: memref<1x4x256xf32, #tpu.memory_space<vmem>>, %arg3: memref<1x4x4xf32, #tpu.memory_space<vmem>>, %arg4: memref<4x4xf32, #tpu.memory_space<vmem>>) attributes {dimension_semantics = [#tpu.dimension_semantics<parallel>, #tpu.dimension_semantics<arbitrary>], iteration_bounds = array<i64: 2, 1>, scalar_prefetch = 0 : i64, scratch_operands = 1 : i64, tpu.core_type = #tpu.core_type<tc>, window_params = [{transform_indices = @transform_0, window_bounds = array<i64: 1, 4, 256>}, {transform_indices = @transform_1, window_bounds = array<i64: 1, 4, 4>}]} {
    %c0_i32 = arith.constant 0 : i32
    %0 = arith.cmpi eq, %arg1, %c0_i32 : i32
    %1 = arith.extui %0 : i1 to i32
    %c0_i32_0 = arith.constant 0 : i32
    %2 = arith.cmpi ne, %1, %c0_i32_0 : i32
    scf.if %2 {
      %cst_9 = arith.constant 0.000000e+00 : f32
      %13 = vector.broadcast %cst_9 : f32 to vector<4x4xf32>
      %c0_10 = arith.constant 0 : index
      %c0_11 = arith.constant 0 : index
      %14 = vector.load %arg4[%c0_10, %c0_11] : memref<4x4xf32, #tpu.memory_space<vmem>>, vector<4x4xf32>
      tpu.vector_store %arg4[%c0_10, %c0_11], %13 {strides = array<i32>} : memref<4x4xf32, #tpu.memory_space<vmem>>, vector<4x4xf32>,
    } else {
    }
    %c0 = arith.constant 0 : index
    %c0_1 = arith.constant 0 : index
    %c0_2 = arith.constant 0 : index
    %3 = vector.load %arg2[%c0, %c0_1, %c0_2] : memref<1x4x256xf32, #tpu.memory_space<vmem>>, vector<1x4x256xf32>
    %4 = vector.shape_cast %3 : vector<1x4x256xf32> to vector<4x256xf32>
    %5 = arith.truncf %4 : vector<4x256xf32> to vector<4x256xbf16>
    %c0_3 = arith.constant 0 : index
    %c0_4 = arith.constant 0 : index
    %6 = vector.load %arg4[%c0_3, %c0_4] : memref<4x4xf32, #tpu.memory_space<vmem>>, vector<4x4xf32>
    %cst = arith.constant dense<0.000000e+00> : vector<4x4xf32>
    %7 = tpu.matmul %5, %5, %cst {dimension_numbers = #tpu.dot_dimension_numbers<[1], [1], [0], [0], [0, 0, 1, 0], [], []>} : vector<4x256xbf16>, vector<4x256xbf16>, vector<4x4xf32> -> vector<4x4xf32>
    %8 = arith.addf %6, %7 : vector<4x4xf32>
    %c0_5 = arith.constant 0 : index
    %c0_6 = arith.constant 0 : index
    %9 = vector.load %arg4[%c0_5, %c0_6] : memref<4x4xf32, #tpu.memory_space<vmem>>, vector<4x4xf32>
    tpu.vector_store %arg4[%c0_5, %c0_6], %8 {strides = array<i32>} : memref<4x4xf32, #tpu.memory_space<vmem>>, vector<4x4xf32>,
    %c0_i32_7 = arith.constant 0 : i32
    %10 = arith.cmpi eq, %arg1, %c0_i32_7 : i32
    %11 = arith.extui %10 : i1 to i32
    %c0_i32_8 = arith.constant 0 : i32
    %12 = arith.cmpi ne, %11, %c0_i32_8 : i32
    scf.if %12 {
      %c0_9 = arith.constant 0 : index
      %c0_10 = arith.constant 0 : index
      %13 = vector.load %arg4[%c0_9, %c0_10] : memref<4x4xf32, #tpu.memory_space<vmem>>, vector<4x4xf32>
      %cst_11 = arith.constant 9.765625E-4 : f32
      %14 = vector.broadcast %cst_11 : f32 to vector<4x4xf32>
      %15 = arith.mulf %13, %14 : vector<4x4xf32>
      %c0_12 = arith.constant 0 : index
      %c0_13 = arith.constant 0 : index
      %c0_14 = arith.constant 0 : index
      %16 = vector.load %arg3[%c0_12, %c0_13, %c0_14] : memref<1x4x4xf32, #tpu.memory_space<vmem>>, vector<1x4x4xf32>
      %17 = vector.shape_cast %16 : vector<1x4x4xf32> to vector<4x4xf32>
      %18 = vector.shape_cast %15 : vector<4x4xf32> to vector<1x4x4xf32>
      tpu.vector_store %arg3[%c0_12, %c0_13, %c0_14], %18 {strides = array<i32>} : memref<1x4x4xf32, #tpu.memory_space<vmem>>, vector<1x4x4xf32>,
    } else {
    }
    return
  }
  func.func @transform_0(%arg0: i32, %arg1: i32) -> (i32, i32, i32) {
    %c0_i32 = arith.constant 0 : i32
    %c0_i32_0 = arith.constant 0 : i32
    return %arg0, %c0_i32, %arg1 : i32, i32, i32
  }
  func.func @transform_1(%arg0: i32, %arg1: i32) -> (i32, i32, i32) {
    %c0_i32 = arith.constant 0 : i32
    %c0_i32_0 = arith.constant 0 : i32
    %c0_i32_1 = arith.constant 0 : i32
    return %arg0, %c0_i32, %c0_i32_0 : i32, i32, i32
  }
}

</mosaic_0001>

<bundles_post_ra>
// kernel: tpu_custom_call.1
= control target key start
LH: loop header
LB: loop body
LE: loop exit
PB: predicated region body
PF: predicated region fallthrough
CT: control target
= control target key end

     0   :  { %6 = vsyncpa [#allocation4], 0  ;;  %s648_s0 = inlined_call_operand.hbm [shape: f32[2,4,256], index: 0, kind: input, shape index: {}]   ;;  %s649_s1 = inlined_call_operand.hbm [shape: f32[2,4,4], index: 1, kind: output, shape index: {}]  }
   0x1   :  { %8 = vsyncpa [#allocation4 + $0x1], 0 }
   0x2   :  { %9 = vsyncpa [#allocation5], 0 }
   0x3   :  { %11 = vsyncpa [#allocation5 + $0x1], 0  ;;  %s510_s6 = smov 0   ;;  %s512_s7 = smov 0  }
   0x4   :  { %s514_s8 = smov 0   ;;  %s516_s9 = smov 0  }
   0x5   :  { %s518_s10 = smov 0   ;;  %s520_s11 = smov 0  }
   0x6 LB: > { %s308_s12 = sadd.s32 4294967295, %s495_s11   ;;  %s309_s13 = sadd.s32 4294967294, %s495_s11   ;;  %s495_s11 = sphi %s520_s11, %s17_s11   ;;  %s491_s10 = sphi %s518_s10, %s661_s10   ;;  %s487_s9 = sphi %s516_s9, %s660_s9   ;;  %s483_s8 = sphi %s514_s8, %s659_s8   ;;  %s479_s7 = sphi %s512_s7, %s658_s7   ;;  %s475_s6 = sphi %s510_s6, %s657_s6  }
   0x7   : > { %s29_s14 = sadd.s32 1, %s491_s10  ;;  %s38_s15 = sadd.s32 1, %s483_s8 }
   0x8   : > { %p31_p0 = scmp.ge.s32.totalorder %s29_s14, 2  ;;  %p45_p1 = scmp.ne.s32.totalorder %s483_s8, %s479_s7 }
   0x9   : > { %p46_p2 = scmp.eq.s32.totalorder %s495_s11, 0  ;;  %p51_p3 = scmp.ne.s32.totalorder %s479_s7, %s475_s6 }
   0xa   : > { %s663_s14 = smov (%p31_p0, %s29_s14), 0  ;;  %p52_p5 = scmp.eq.s32.totalorder %s308_s12, 0 }
   0xb   : > { %p551_p4 = por %p46_p2, %p45_p1  ;;  %s33_s17 = ssub.s32 %s491_s10, %s663_s14 }
   0xc   : > { %p75_p6 = scmp.eq.s32.totalorder %s308_s12, 1  ;;  %p36_p7 = scmp.eq.s32.totalorder %s33_s17, 0 }
   0xd   : > { %p557_p8 = por %p52_p5, %p51_p3  ;;  %p81_p10 = scmp.eq.s32.totalorder %s309_s13, 1 }
   0xe   : > { %p561_p9 = por %p75_p6, %p45_p1  ;;  %p335_p13 = scmp.lt.s32.totalorder %s495_s11, 2 }
   0xf   : > { %s566_s20 = scalar_select %p36_p7, %s483_s8, %s38_s15  }
  0x10   : > { %p568_p11 = por %p81_p10, %p51_p3  ;;  %s101_s22 = sand.u32 1, %s483_s8  }
  0x11   : > { %s312_s23 = sshll.u32 %s101_s22, 3  ;;  %s322_s24 = sshll.u32 %s491_s10, 7 }
  0x12   : > { %s653_s21 = scalar_select %p568_p11, 1, 0 }
  0x13   : > { %s113_s27 = scalar_lea.hbm %s648_s0, %s322_s24  ;;  %s105_s28 = scalar_lea.vmem [#allocation3], %s312_s23 }
  0x14   : > { %s115_s29 = sshll.u32 %s105_s28, 4  ;;  %p581_p0 = pnand %p335_p13, %p551_p4  ;;  %s116_s29 = int_to_ptr.vmem [resolvable:$true] %s115_s29 }
  0x15   : > { %p315_p1 = scmp.ge.s32.totalorder %s495_s11, 1  ;;  %p120_p2 = scmp.lt.s32.totalorder %s495_s11, 3 }
  0x16   : > { %s102_s2 = scalar_lea.sflag [#allocation4], %s101_s22  ;;  %p389_p3 = pneg %p581_p0 }
  0x17   : > { %s400_s3 = scalar_lea.vmem %s116_s29, 128  ;;  %s497_s4 = smov [#allocation3]  }
  0x18   : > { %p401_p5 = scmp.ne.s32.totalorder %s116_s29, %s400_s3  ;;  %s405_s5 = sshll.u32 %s497_s4, 4  ;;  %s406_s5 = int_to_ptr.vmem [resolvable:$false] %s405_s5 }
  0x19   : > { %s407_s12 = scalar_lea.vmem %s406_s5, 256  ;;  %p408_p10 = scmp.lt.s32.totalorder %s116_s29, %s406_s5 }
  0x1a   : > { %p403_p6 = pnand %p401_p5, %p389_p3  ;;  %p409_p12 = scmp.lt.s32.totalorder %s407_s12, %s400_s3 }
  0x1c   : > { %p404_p7 = pneg %p403_p6  ;;  %p410_p4 = por %p409_p12, %p408_p10 }
  0x1e   : > { %p411_p13 = pnand %p410_p4, %p404_p7 }
  0x20   : > { %414 = shalt.err (!%p411_p13)
}
  0x21   : > { %330 = dma.hbm_to_vmem [thread:$0]  (!%p581_p0), %s113_s27, 128, %s116_s29, %s102_s2  }
  0x22   : > { %p121_p11 = pnand %p315_p1, %p120_p2 }
  0x23   : > { %s596_s13 = sand.u32 (!%p121_p11), 1, %s479_s7  }
  0x24   : > { %124 = sbr.rel (%p121_p11) target bundleno = 273 (0x111), region = 24  ;;  %s316_s15 = sshll.u32 (!%p121_p11), %s596_s13, 3 }
  0x25   : > { %s127_s16 = scalar_lea.sflag (!%p121_p11), [#allocation4], %s596_s13  ;;  %s130_s17 = scalar_lea.vmem (!%p121_p11), [#allocation3], %s316_s15 }
  0x29   : > { %466 = dma.done.wait (%p557_p8), %s127_s16, 128  }
  0x2a   : > { %468 = vsyncadd (%p557_p8), %s127_s16, 4294967168  ;;  %vm155_vm0 = vcmask 27648   ;;  %v498_v0 = vmov 0.0   ;;  %v157_v1 = vld [vmem:[%s130_s17] sm:$0xff]  ;;  %s317_s18 = sshll.u32 %s596_s13, 2  ;;  %s319_s22 = sshll.u32 %s487_s9, 6 }
  0x2b   : > { %156 = vst.msk [vmem:[#allocation2] sm:$0xf] %vm155_vm0, %v498_v0  ;;  %v159_v2 = vcombine.high %v157_v1, %v157_v1  ;;  %v161_v3 = vpack.c.bf16 %v157_v1, %v157_v1  ;;  %s148_s23 = scalar_lea.vmem [#allocation6], %s317_s18  ;;  %s225_s27 = scalar_lea.hbm %s649_s1, %s319_s22 }
  0x2c   : > { %s227_s24 = sshll.u32 %s148_s23, 4  ;;  %s214_s28 = scalar_lea.sflag [#allocation5], %s596_s13  ;;  %s228_s24 = int_to_ptr.vmem [resolvable:$true] %s227_s24 }
  0x2d   : > { %v162_v4 = vpack.c.bf16 %v159_v2, %v159_v2  ;;  %s415_s29 = scalar_lea.vmem %s228_s24, 64  ;;  %s499_s30 = smov [#allocation6]  }
  0x2e   : > { %p416_p8 = scmp.ne.s32.totalorder %s228_s24, %s415_s29  ;;  %s419_s2 = sshll.u32 %s499_s30, 4  ;;  %s420_s2 = int_to_ptr.vmem [resolvable:$false] %s419_s2 }
  0x2f   : > { %178 = vmatprep.subr.bf16.mxu0 %v162_v4  ;;  %196 = vmatprep.mubr.bf16.mxu0 %v162_v4  ;;  %s421_s9 = scalar_lea.vmem %s420_s2, 128  ;;  %p422_p0 = scmp.lt.s32.totalorder %s228_s24, %s420_s2 }
  0x30   : > { %179 = vmatpush1.bf16.xpose.msra.mxu0 %v161_v3  ;;  %p417_p11 = pnand %p416_p8, %p561_p9  ;;  %p423_p1 = scmp.lt.s32.totalorder %s421_s9, %s415_s29 }
  0x32   : > { %v163_v5 = vld [vmem:[#allocation2] sm:$0xf]  ;;  %p418_p12 = pneg %p417_p11  ;;  %p424_p2 = por %p423_p1, %p422_p0 }
  0x34   : > { %p425_p3 = pnand %p424_p2, %p418_p12 }
  0x37   : > { %197 = vmatmul.mubr.bf16.vlgmr.msra.gmra.mxu0 %v161_v3 }
  0xf7   : > { %v198_v6 = vpop.f32.mrf.mxu0 }
  0xf8   : > { %v204_v7 = vadd.f32 %v198_v6, %v163_v5 }
  0xf9   : > { %v200_v8 = vpop.f32.mrf.mxu0 }
  0xfa   : > { %206 = vst.msk [vmem:[#allocation2] sm:$0xf] %vm155_vm0, %v204_v7 }
  0xfb   : > { %v201_v9 = vpop.f32.mrf.mxu0 }
  0xfd   : > { %v202_v10 = vpop.f32.mrf.mxu0 }
 0x101   : > { %v210_v11 = vld [vmem:[#allocation2] sm:$0xf] }
 0x102   : > { %v211_v12 = vmul.f32 0.0009765625, %v210_v11 }
 0x104   : > { %212 = vst.msk [vmem:[%s148_s23] sm:$0xf] %vm155_vm0, %v211_v12 }
 0x105   : > { %428 = shalt.err (!%p425_p3)
}
 0x106   : > { %s429_s3 = scalar_lea.hbm %s225_s27, 64  ;;  %s433_s12 = scalar_lea.hbm %s649_s1, 128 }
 0x107   : > { %p430_p5 = scmp.ne.s32.totalorder %s225_s27, %s429_s3  ;;  %p434_p10 = scmp.lt.s32.totalorder %s225_s27, %s649_s1 }
 0x108   : > { %p435_p4 = scmp.lt.s32.totalorder %s433_s12, %s429_s3 }
 0x109   : > { %p431_p6 = pnand %p430_p5, %p561_p9 }
 0x10a   : > { %p436_p13 = por %p435_p4, %p434_p10 }
 0x10b   : > { %p432_p7 = pneg %p431_p6 }
 0x10d   : > { %p437_p8 = pnand %p436_p13, %p432_p7 }
 0x10f   : > { %440 = shalt.err (!%p437_p8)
}
 0x110   : > { %325 = dma.vmem_to_hbm [thread:$0]  (%p561_p9), %s228_s24, 64, %s225_s27, %s214_s28  }
 0x111 PF: > { %s239_s16 = sand.u32 1, %s475_s6   ;;  %p655_p11 = scmp.ne.s32.totalorder %s653_s21, 0 }
 0x112   : > { %p656_p12 = scmp.ge.s32.totalorder %s495_s11, 2  ;;  %s240_s17 = scalar_lea.sflag [#allocation5], %s239_s16 }
 0x114   : > { %p332_p0 = pnand %p656_p12, %p655_p11 }
 0x116   : > { %p333_p1 = pneg %p332_p0 }
 0x118   : > { %470 = dma.done.wait (%p333_p1), %s240_s17, 64  }
 0x119   : > { %472 = vsyncadd (%p333_p1), %s240_s17, 4294967232  ;;  %s17_s11 = sadd.s32 1, %s495_s11   ;;  %s657_s6 = smov %s479_s7 }
 0x11a   : > { %p14_p2 = scmp.ge.s32.totalorder %s17_s11, 4   ;;  %s658_s7 = smov %s483_s8 }
 0x11b   : > { %s659_s8 = smov %s566_s20  ;;  %s660_s9 = smov %s491_s10 }
 0x11c   : > { %s661_s10 = smov %s663_s14  ;;  %16 = sbr.rel (!%p14_p2) target bundleno = 6 (0x6), region = 77 }
 0x121   :  { %245 = vsyncpa [#allocation4], 1 }
 0x122   :  { %247 = vsyncpa [#allocation4 + $0x1], 1 }
 0x123   :  { %248 = vsyncpa [#allocation5], 1 }
 0x124   :  { %250 = vsyncpa [#allocation5 + $0x1], 1 }

</bundles_post_ra>
